<compile_context>
chip_gen: v7x
topology: tpu7x:2x2x1
jax: 0.10.0
libtpu: 0.0.40
codegen_flags: <defaults>
</compile_context>

<pallas_src>
import jax
import jax.numpy as jnp
from jax.experimental import pallas as pl
from jax.experimental.pallas import tpu as pltpu


# ---------------------------------------------------------------------------
# Path A: fully fused kron kernel (one lane-dense MXU matmul per grid step)
# ---------------------------------------------------------------------------
def _fused_kron_kernel(x_ref, big_ref, o_ref):
    # x_ref  : (TB, F*3*L)      one row per batch element
    # big_ref: (F*3*L, H*3*L)   precomputed W (x) S (x) T  (kept resident)
    # o_ref  : (TB, H*3*L)
    o_ref[...] = jnp.dot(
        x_ref[...], big_ref[...], preferred_element_type=jnp.float32
    ).astype(o_ref.dtype)


def _pick_batch_tile_rows(batch, max_rows=512):
    """Batch elements per grid step for Path A.  Must divide batch; if it is a
    proper tile (< batch) it must be a multiple of 8 so the block rows stay
    sublane-aligned for the (8,128) constraint."""
    if batch <= max_rows:
        return batch
    best = None
    for d in range(8, max_rows + 1, 8):
        if batch % d == 0:
            best = d
    return best if best is not None else batch


# ---------------------------------------------------------------------------
# Path B: two-stage kernel (temporal matmul + per-element kron(W,S)^T)
# ---------------------------------------------------------------------------
def _pick_batch_tile_two_stage(batch, f3, h3, target_rows=256):
    if batch * f3 <= target_rows:
        return batch
    tb = batch  # fallback: single step with full-extent blocks
    for d in range(1, batch + 1):
        if batch % d:
            continue
        if d * f3 > target_rows:
            continue
        if (d * f3) % 8 or (d * h3) % 8:
            continue
        tb = d
    return tb


def _make_two_stage_kernel(tb, f3, h3):
    def kernel(x_ref, t_ref, ct_ref, o_ref):
        # x_ref : (tb*f3, L), t_ref : (L, L), ct_ref: (h3, f3), o_ref: (tb*h3, L)
        y1 = jnp.dot(x_ref[...], t_ref[...],
                     preferred_element_type=jnp.float32)       # (tb*f3, L) f32
        ct = ct_ref[...]
        for t in range(tb):                                    # static unroll
            res = jnp.dot(ct, y1[t * f3:(t + 1) * f3, :],
                          preferred_element_type=jnp.float32)  # (h3, L)
            o_ref[t * h3:(t + 1) * h3, :] = res.astype(o_ref.dtype)
    return kernel


# ---------------------------------------------------------------------------
# Wrapper
# ---------------------------------------------------------------------------
def stgcn_forward(x, temporal_mat, feature_mat, spatial_mat,
                  in_feature, seq_length, hidden_dim,
                  max_kron_bytes=16 * 1024 * 1024):
    # Mirror torch's view(-1, F, 3, L).
    x = x.reshape(-1, in_feature, 3, seq_length)
    B = x.shape[0]
    F3, H3, L = 3 * in_feature, 3 * hidden_dim, seq_length
    K, N = F3 * L, H3 * L
    itemsize = jnp.dtype(x.dtype).itemsize
    kron_bytes = K * N * itemsize

    if kron_bytes <= max_kron_bytes:
        # ---------------- Path A: one fused matmul ----------------
        x_rows = x.reshape(B, K)  # free row-major flatten of (f, s, l)
        big = jnp.einsum('fh,sm,ln->fslhmn',
                         feature_mat, spatial_mat, temporal_mat
                         ).reshape(K, N).astype(x.dtype)
        tb = _pick_batch_tile_rows(B)
        grid = (B // tb,)
        out_rows = pl.pallas_call(
            _fused_kron_kernel,
            out_shape=jax.ShapeDtypeStruct((B, N), x.dtype),
            grid_spec=pltpu.PrefetchScalarGridSpec(
                num_scalar_prefetch=0,
                grid=grid,
                in_specs=[
                    pl.BlockSpec((tb, K), lambda b: (b, 0)),   # activations
                    pl.BlockSpec((K, N), lambda b: (0, 0)),    # fused W(x)S(x)T
                ],
                out_specs=pl.BlockSpec((tb, N), lambda b: (b, 0)),
            ),
            compiler_params=pltpu.CompilerParams(
                dimension_semantics=("parallel",)),
        )(x_rows, big)
        # Free contiguous reshape: (h, ms, mt) row-major == (3H, L) layout.
        return out_rows.reshape(B, H3, L)

    # ---------------- Path B: two-stage kernel (large L fallback) ----------------
    # TODO(synk): for extremely large batch with no 8-aligned divisor, Path B
    # falls back to a single full-extent block; add partial-block handling if
    # such shapes ever show up.
    x2 = x.reshape(B * F3, L)
    ct = jnp.einsum('fh,sm->hmfs', feature_mat, spatial_mat).reshape(H3, F3)
    tb = _pick_batch_tile_two_stage(B, F3, H3)
    grid = (B // tb,)
    out2 = pl.pallas_call(
        _make_two_stage_kernel(tb, F3, H3),
        out_shape=jax.ShapeDtypeStruct((B * H3, L), x.dtype),
        grid_spec=pltpu.PrefetchScalarGridSpec(
            num_scalar_prefetch=0,
            grid=grid,
            in_specs=[
                pl.BlockSpec((tb * F3, L), lambda b: (b, 0)),   # activations
                pl.BlockSpec((L, L), lambda b: (0, 0)),         # temporal mat
                pl.BlockSpec((H3, F3), lambda b: (0, 0)),       # kron(W,S)^T
            ],
            out_specs=pl.BlockSpec((tb * H3, L), lambda b: (b, 0)),
        ),
        compiler_params=pltpu.CompilerParams(
            dimension_semantics=("parallel",)),
    )(x2, temporal_mat, ct)
    return out2.reshape(B, H3, L)


def stgcn_reference(x, temporal_mat, feature_mat, spatial_mat,
                    in_feature, seq_length, hidden_dim):
    x = x.reshape(-1, in_feature, 3, seq_length)
    x = jnp.einsum('bfsl,lm->bfsm', x, temporal_mat)
    x = jnp.einsum('bfsl,fm->bmsl', x, feature_mat)
    x = jnp.einsum('bfsl,sm->bfml', x, spatial_mat)
    return x.reshape(-1, hidden_dim * 3, seq_length)


if __name__ == "__main__":
    # Small shapes consistent with the module's forward pass.
    B, F_, L, H = 2, 4, 16, 8   # batch, in_feature, seq_length, hidden_dim

    key = jax.random.PRNGKey(0)
    kx, kt, kf, ks = jax.random.split(key, 4)

    x = jax.random.normal(kx, (B, F_, 3, L), dtype=jnp.float32)
    temporal_mat = jax.random.normal(kt, (L, L), dtype=jnp.float32)
    feature_mat = jax.random.normal(kf, (F_, H), dtype=jnp.float32)
    spatial_mat = jax.random.normal(ks, (3, 3), dtype=jnp.float32)

    ref = stgcn_reference(x, temporal_mat, feature_mat, spatial_mat,
                          in_feature=F_, seq_length=L, hidden_dim=H)

    # Path A (fused-kron single matmul) -- the default at these shapes.
    out_a = stgcn_forward(x, temporal_mat, feature_mat, spatial_mat,
                          in_feature=F_, seq_length=L, hidden_dim=H)
    out_a = jax.block_until_ready(out_a)
    assert out_a.shape == (B, 3 * H, L), out_a.shape
    assert jnp.allclose(out_a, ref, atol=1e-3, rtol=1e-3), "Path A mismatch"

    # Path B (two-stage fallback), forced, to keep it validated on hardware.
    out_b = stgcn_forward(x, temporal_mat, feature_mat, spatial_mat,
                          in_feature=F_, seq_length=L, hidden_dim=H,
                          max_kron_bytes=0)
    out_b = jax.block_until_ready(out_b)
    assert out_b.shape == (B, 3 * H, L), out_b.shape
    assert jnp.allclose(out_b, ref, atol=1e-3, rtol=1e-3), "Path B mismatch"

    print("KERNEL_OK")
</pallas_src>

<mosaic_0001>
module attributes {stable_mosaic.version = 11 : i64} {
  func.func @_fused_kron_kernel(%arg0: i32, %arg1: memref<2x192xf32, #tpu.memory_space<vmem>>, %arg2: memref<192x384xf32, #tpu.memory_space<vmem>>, %arg3: memref<2x384xf32, #tpu.memory_space<vmem>>) attributes {dimension_semantics = [#tpu.dimension_semantics<parallel>], iteration_bounds = array<i64: 1>, scalar_prefetch = 0 : i64, scratch_operands = 0 : i64, tpu.core_type = #tpu.core_type<tc>, window_params = [{transform_indices = @transform_0, window_bounds = array<i64: 2, 192>}, {pipeline_mode = #tpu.pipeline_mode<synchronous>, transform_indices = @transform_1, window_bounds = array<i64: 192, 384>}, {transform_indices = @transform_2, window_bounds = array<i64: 2, 384>}]} {
    %c0 = arith.constant 0 : index
    %c0_0 = arith.constant 0 : index
    %0 = vector.load %arg1[%c0, %c0_0] : memref<2x192xf32, #tpu.memory_space<vmem>>, vector<2x192xf32>
    %c0_1 = arith.constant 0 : index
    %c0_2 = arith.constant 0 : index
    %1 = vector.load %arg2[%c0_1, %c0_2] : memref<192x384xf32, #tpu.memory_space<vmem>>, vector<192x384xf32>
    %cst = arith.constant dense<0.000000e+00> : vector<2x384xf32>
    %2 = tpu.matmul %0, %1, %cst {dimension_numbers = #tpu.dot_dimension_numbers<[1], [0], [0], [1], [0, 0, 1, 1], [], []>} : vector<2x192xf32>, vector<192x384xf32>, vector<2x384xf32> -> vector<2x384xf32>
    %c0_3 = arith.constant 0 : index
    %c0_4 = arith.constant 0 : index
    %3 = vector.load %arg3[%c0_3, %c0_4] : memref<2x384xf32, #tpu.memory_space<vmem>>, vector<2x384xf32>
    tpu.vector_store %arg3[%c0_3, %c0_4], %2 {strides = array<i32>} : memref<2x384xf32, #tpu.memory_space<vmem>>, vector<2x384xf32>,
    return
  }
  func.func @transform_0(%arg0: i32) -> (i32, i32) {
    %c0_i32 = arith.constant 0 : i32
    %c0_i32_0 = arith.constant 0 : i32
    return %arg0, %c0_i32 : i32, i32
  }
  func.func @transform_1(%arg0: i32) -> (i32, i32) {
    %c0_i32 = arith.constant 0 : i32
    %c0_i32_0 = arith.constant 0 : i32
    %c0_i32_1 = arith.constant 0 : i32
    return %c0_i32, %c0_i32_0 : i32, i32
  }
  func.func @transform_2(%arg0: i32) -> (i32, i32) {
    %c0_i32 = arith.constant 0 : i32
    %c0_i32_0 = arith.constant 0 : i32
    return %arg0, %c0_i32 : i32, i32
  }
}

</mosaic_0001>

<bundles_post_ra>
// kernel: tpu_custom_call.1
= control target key start
LH: loop header
LB: loop body
LE: loop exit
PB: predicated region body
PF: predicated region fallthrough
CT: control target
= control target key end

     0   :  { %7 = vsyncpa [#allocation3], 0  ;;  %s553_s0 = inlined_call_operand.hbm [shape: f32[2,192], index: 0, kind: input, shape index: {}]   ;;  %s554_s1 = inlined_call_operand.hbm [shape: f32[192,384], index: 1, kind: input, shape index: {}]   ;;  %s555_s2 = inlined_call_operand.hbm [shape: f32[2,384], index: 2, kind: output, shape index: {}]  }
   0x1   :  { %8 = vsyncpa [#allocation6], 0 }
   0x2   :  { %9 = vsyncpa [#allocation4], 0  ;;  %s468_s9 = smov [#allocation2]   ;;  %s469_s11 = smov [#allocation5]  }
   0x3   :  { %s16_s10 = sshll.u32 %s468_s9, 4  ;;  %s25_s12 = sshll.u32 %s469_s11, 4  ;;  %s17_s10 = int_to_ptr.vmem [resolvable:$true] %s16_s10  ;;  %s490_s12 = int_to_ptr.vmem [resolvable:$true] %s25_s12 }
   0x4   :  { %s396_s15 = scalar_lea.hbm %s553_s0, 64 }
   0x5   :  { %p397_p0 = scmp.ne.s32.totalorder %s553_s0, %s396_s15  ;;  %p400_p1 = scmp.lt.u32.totalorder %s396_s15, %s553_s0 }
   0x7   :  { %p402_p2 = pnand %p400_p1, %p397_p0 }
   0x9   :  { %405 = shalt.err (!%p402_p2)
}
   0xa   :  { %s406_s20 = scalar_lea.vmem %s17_s10, 64  ;;  %p411_p4 = scmp.lt.s32.totalorder %s17_s10, %s17_s10 }
   0xb   :  { %p407_p3 = scmp.ne.s32.totalorder %s17_s10, %s406_s20  ;;  %p412_p5 = scmp.lt.s32.totalorder %s406_s20, %s406_s20 }
   0xd   :  { %p413_p6 = por %p412_p5, %p411_p4 }
   0xf   :  { %p414_p7 = pnand %p413_p6, %p407_p3 }
  0x11   :  { %417 = shalt.err (!%p414_p7)
}
  0x12   :  { %19 = dma.hbm_to_vmem [thread:$0]  %s553_s0, 64, %s17_s10, [#allocation3]  }
  0x13   :  { %s418_s25 = scalar_lea.hbm %s554_s1, 9216 }
  0x14   :  { %p419_p8 = scmp.ne.s32.totalorder %s554_s1, %s418_s25  ;;  %p422_p9 = scmp.lt.u32.totalorder %s418_s25, %s554_s1 }
  0x16   :  { %p424_p10 = pnand %p422_p9, %p419_p8 }
  0x18   :  { %427 = shalt.err (!%p424_p10)
}
  0x19   :  { %s428_s30 = scalar_lea.vmem %s490_s12, 9216  ;;  %p433_p12 = scmp.lt.s32.totalorder %s490_s12, %s490_s12 }
  0x1a   :  { %p429_p11 = scmp.ne.s32.totalorder %s490_s12, %s428_s30  ;;  %p434_p13 = scmp.lt.s32.totalorder %s428_s30, %s428_s30 }
  0x1c   :  { %p435_p0 = por %p434_p13, %p433_p12 }
  0x1e   :  { %p436_p1 = pnand %p435_p0, %p429_p11 }
  0x20   :  { %439 = shalt.err (!%p436_p1)
}
  0x21   :  { %s470_s0 = smov 384   ;;  %s471_s3 = smov 24  }
  0x22   :  { %31 = dma.hbm_to_vmem [thread:$0]  %s554_s1, 9216, %s490_s12, [#allocation6], %s470_s0, %s470_s0, %s471_s3  }
  0x23   :  { %462 = dma.done.wait [#allocation3], 64  }
  0x24   :  { %463 = vsyncadd [#allocation3], 4294967232 }
  0x25   :  { %464 = dma.done.wait [#allocation6], 9216  }
  0x26   :  { %465 = vsyncadd [#allocation6], 4294958080  ;;  %v472_v0 = vmov 0.0|0.0   ;;  %v40_v1 = vld [vmem:[#allocation5 + $0x8] sm:$0xff]  ;;  %v43_v2 = vld [vmem:[#allocation5 + $0x20] sm:$0xff]  ;;  %vm121_vm0 = vcmask 523264  }
  0x27   :  { %353 = vmatprep.subr.bf16.mxu1 %v472_v0  ;;  %v39_v3 = vld [vmem:[#allocation5] sm:$0xff]  ;;  %v305_v4 = vpack.c.bf16 %v43_v2, %v40_v1  ;;  %v42_v5 = vld [vmem:[#allocation5 + $0x18] sm:$0xff]  ;;  %v41_v6 = vld [vmem:[#allocation5 + $0x10] sm:$0xff]  ;;  %s474_s1 = smov [#allocation7]  }
  0x28   :  { %v44_v7 = vld [vmem:[#allocation5 + $0x28] sm:$0xff]  ;;  %v307_v8 = vpack.c.bf16 %v42_v5, %v39_v3  ;;  %v46_v10 = vld [vmem:[#allocation5 + $0x38] sm:$0xff]  ;;  %v49_v11 = vld [vmem:[#allocation5 + $0x50] sm:$0xff]  ;;  %s292_s6 = sshll.u32 %s474_s1, 4  ;;  %s293_s6 = int_to_ptr.vmem [resolvable:$true] %s292_s6 }
  0x29   :  { %v354_v9 = vpack.c.bf16 %v44_v7, %v41_v6  ;;  %v45_v12 = vld [vmem:[#allocation5 + $0x30] sm:$0xff]  ;;  %306 = vmatprep.subr.bf16.mxu0 %v305_v4  ;;  %v309_v13 = vpack.c.bf16 %v49_v11, %v46_v10  ;;  %v48_v14 = vld [vmem:[#allocation5 + $0x48] sm:$0xff]  ;;  %v47_v15 = vld [vmem:[#allocation5 + $0x40] sm:$0xff]  ;;  %s440_s7 = scalar_lea.vmem %s293_s6, 96  ;;  %p445_p3 = scmp.lt.s32.totalorder %s293_s6, %s293_s6 }
  0x2a   :  { %v50_v16 = vld [vmem:[#allocation5 + $0x58] sm:$0xff]  ;;  %308 = vmatpush1.bf16.msra.mxu0 %v307_v8  ;;  %v311_v17 = vpack.c.bf16 %v48_v14, %v45_v12  ;;  %v52_v19 = vld [vmem:[#allocation5 + $0x68] sm:$0xff]  ;;  %v55_v20 = vld [vmem:[#allocation5 + $0x80] sm:$0xff]  ;;  %p441_p2 = scmp.ne.s32.totalorder %s293_s6, %s440_s7  ;;  %p446_p4 = scmp.lt.s32.totalorder %s440_s7, %s440_s7 }
  0x2b   :  { %355 = vmatpush1.bf16.msra.mxu1 %v354_v9  ;;  %v357_v18 = vpack.c.bf16 %v50_v16, %v47_v15  ;;  %v51_v21 = vld [vmem:[#allocation5 + $0x60] sm:$0xff]  ;;  %310 = vmatprep.subr.bf16.mxu0 %v309_v13  ;;  %v313_v22 = vpack.c.bf16 %v55_v20, %v52_v19  ;;  %v54_v23 = vld [vmem:[#allocation5 + $0x78] sm:$0xff]  ;;  %v53_v24 = vld [vmem:[#allocation5 + $0x70] sm:$0xff] }
  0x2c   :  { %356 = vmatprep.subr.bf16.mxu1 %v472_v0  ;;  %v56_v25 = vld [vmem:[#allocation5 + $0x88] sm:$0xff]  ;;  %v58_v26 = vld [vmem:[#allocation5 + $0x98] sm:$0xff]  ;;  %v61_v27 = vld [vmem:[#allocation5 + $0xb0] sm:$0xff]  ;;  %v315_v28 = vpack.c.bf16 %v54_v23, %v51_v21  ;;  %p447_p5 = por %p446_p4, %p445_p3 }
  0x2d   :  { %v360_v29 = vpack.c.bf16 %v56_v25, %v53_v24  ;;  %v57_v30 = vld [vmem:[#allocation5 + $0x90] sm:$0xff]  ;;  %v317_v31 = vpack.c.bf16 %v61_v27, %v58_v26  ;;  %v60_v32 = vld [vmem:[#allocation5 + $0xa8] sm:$0xff]  ;;  %v59_v33 = vld [vmem:[#allocation5 + $0xa0] sm:$0xff] }
  0x2e   :  { %312 = vmatpush1.bf16.msra.mxu0 %v311_v17  ;;  %v62_v34 = vld [vmem:[#allocation5 + $0xb8] sm:$0xff]  ;;  %v64_v35 = vld [vmem:[#allocation5 + $0xc8] sm:$0xff]  ;;  %v67_v36 = vld [vmem:[#allocation5 + $0xe0] sm:$0xff]  ;;  %v319_v37 = vpack.c.bf16 %v60_v32, %v57_v30  ;;  %p448_p6 = pnand %p447_p5, %p441_p2 }
  0x2f   :  { %358 = vmatpush1.bf16.msra.mxu1 %v357_v18  ;;  %314 = vmatprep.subr.bf16.mxu0 %v313_v22  ;;  %v363_v38 = vpack.c.bf16 %v62_v34, %v59_v33  ;;  %v63_v39 = vld [vmem:[#allocation5 + $0xc0] sm:$0xff]  ;;  %v321_v40 = vpack.c.bf16 %v67_v36, %v64_v35  ;;  %v66_v41 = vld [vmem:[#allocation5 + $0xd8] sm:$0xff]  ;;  %v65_v42 = vld [vmem:[#allocation5 + $0xd0] sm:$0xff] }
  0x30   :  { %359 = vmatprep.subr.bf16.mxu1 %v472_v0  ;;  %v68_v43 = vld [vmem:[#allocation5 + $0xe8] sm:$0xff]  ;;  %v70_v44 = vld [vmem:[#allocation5 + $0xf8] sm:$0xff]  ;;  %v73_v45 = vld [vmem:[#allocation5 + $0x110] sm:$0xff]  ;;  %v323_v46 = vpack.c.bf16 %v66_v41, %v63_v39 }
  0x31   :  { %v366_v47 = vpack.c.bf16 %v68_v43, %v65_v42  ;;  %v69_v48 = vld [vmem:[#allocation5 + $0xf0] sm:$0xff]  ;;  %v325_v49 = vpack.c.bf16 %v73_v45, %v70_v44  ;;  %v72_v50 = vld [vmem:[#allocation5 + $0x108] sm:$0xff]  ;;  %v71_v51 = vld [vmem:[#allocation5 + $0x100] sm:$0xff] }
  0x32   :  { %316 = vmatpush1.bf16.msra.mxu0 %v315_v28  ;;  %v74_v52 = vld [vmem:[#allocation5 + $0x118] sm:$0xff]  ;;  %v76_v53 = vld [vmem:[#allocation5 + $0x128] sm:$0xff]  ;;  %v79_v54 = vld [vmem:[#allocation5 + $0x140] sm:$0xff]  ;;  %v327_v55 = vpack.c.bf16 %v72_v50, %v69_v48  ;;  %v473_v48 = vmov 1983009808   ;;  %v272_v50 = vlaneseq }
  0x33   :  { %361 = vmatpush1.bf16.msra.mxu1 %v360_v29  ;;  %318 = vmatprep.subr.bf16.mxu0 %v317_v31  ;;  %v369_v56 = vpack.c.bf16 %v74_v52, %v71_v51  ;;  %v75_v57 = vld [vmem:[#allocation5 + $0x120] sm:$0xff]  ;;  %v329_v58 = vpack.c.bf16 %v79_v54, %v76_v53  ;;  %v78_v59 = vld [vmem:[#allocation5 + $0x138] sm:$0xff]  ;;  %v77_v60 = vld [vmem:[#allocation5 + $0x130] sm:$0xff] }
  0x34   :  { %362 = vmatprep.subr.bf16.mxu1 %v472_v0  ;;  %v80_v61 = vld [vmem:[#allocation5 + $0x148] sm:$0xff]  ;;  %v82_v62 = vld [vmem:[#allocation5 + $0x158] sm:$0xff]  ;;  %v85_v63 = vld [vmem:[#allocation5 + $0x170] sm:$0xff]  ;;  %v331_v2 = vpack.c.bf16 %v78_v59, %v75_v57  ;;  %v273_v52 = vshrl.u32 %v272_v50, 7 }
  0x35   :  { %v527_v1 = vld.sshfl [vmem:[#allocation2] sm:$0x33 pattern:$0x76325410]  ;;  %v372_v3 = vpack.c.bf16 %v80_v61, %v77_v60  ;;  %v81_v4 = vld [vmem:[#allocation5 + $0x150] sm:$0xff]  ;;  %v333_v6 = vpack.c.bf16 %v85_v63, %v82_v62  ;;  %v84_v7 = vld [vmem:[#allocation5 + $0x168] sm:$0xff] }
  0x36   :  { %320 = vmatpush1.bf16.msra.mxu0 %v319_v37  ;;  %v119_v5 = vcombine.high %v527_v1, %v527_v1  ;;  %v83_v8 = vld [vmem:[#allocation5 + $0x160] sm:$0xff]  ;;  %v86_v9 = vld [vmem:[#allocation5 + $0x178] sm:$0xff]  ;;  %v88_v10 = vld [vmem:[#allocation5 + $0x188] sm:$0xff]  ;;  %v335_v12 = vpack.c.bf16 %v84_v7, %v81_v4 }
  0x37   :  { %364 = vmatpush1.bf16.msra.mxu1 %v363_v38  ;;  %322 = vmatprep.subr.bf16.mxu0 %v321_v40  ;;  %v91_v11 = vld [vmem:[#allocation5 + $0x1a0] sm:$0xff]  ;;  %v375_v13 = vpack.c.bf16 %v86_v9, %v83_v8  ;;  %v90_v16 = vld [vmem:[#allocation5 + $0x198] sm:$0xff]  ;;  %v89_v17 = vld [vmem:[#allocation5 + $0x190] sm:$0xff] }
  0x38   :  { %365 = vmatprep.subr.bf16.mxu1 %v472_v0  ;;  %303 = vmatprep.mubr.msk.f32.mxu0 %vm121_vm0, %v119_v5  ;;  %v87_v14 = vld [vmem:[#allocation5 + $0x180] sm:$0xff]  ;;  %v337_v15 = vpack.c.bf16 %v91_v11, %v88_v10  ;;  %v92_v18 = vld [vmem:[#allocation5 + $0x1a8] sm:$0xff]  ;;  %v94_v19 = vld [vmem:[#allocation5 + $0x1b8] sm:$0xff] }
  0x39   :  { %304 = vmatprep.mubr.msk.f32.mxu1 %vm121_vm0, %v119_v5  ;;  %v97_v20 = vld [vmem:[#allocation5 + $0x1d0] sm:$0xff]  ;;  %v339_v21 = vpack.c.bf16 %v90_v16, %v87_v14  ;;  %v378_v22 = vpack.c.bf16 %v92_v18, %v89_v17  ;;  %v96_v25 = vld [vmem:[#allocation5 + $0x1c8] sm:$0xff]  ;;  %v95_v26 = vld [vmem:[#allocation5 + $0x1c0] sm:$0xff] }
  0x3a   :  { %324 = vmatpush1.bf16.msra.mxu0 %v323_v46  ;;  %v93_v23 = vld [vmem:[#allocation5 + $0x1b0] sm:$0xff]  ;;  %v341_v24 = vpack.c.bf16 %v97_v20, %v94_v19  ;;  %v98_v27 = vld [vmem:[#allocation5 + $0x1d8] sm:$0xff]  ;;  %v100_v28 = vld [vmem:[#allocation5 + $0x1e8] sm:$0xff] }
  0x3b   :  { %367 = vmatpush1.bf16.msra.mxu1 %v366_v47  ;;  %326 = vmatprep.subr.bf16.mxu0 %v325_v49  ;;  %v103_v29 = vld [vmem:[#allocation5 + $0x200] sm:$0xff]  ;;  %v343_v30 = vpack.c.bf16 %v96_v25, %v93_v23  ;;  %v381_v31 = vpack.c.bf16 %v98_v27, %v95_v26  ;;  %v102_v34 = vld [vmem:[#allocation5 + $0x1f8] sm:$0xff]  ;;  %v101_v35 = vld [vmem:[#allocation5 + $0x1f0] sm:$0xff]  ;;  %v270_v49 = vunpack.c.l.s4 %v473_v48 }
  0x3c   :  { %368 = vmatprep.subr.bf16.mxu1 %v472_v0  ;;  %v99_v32 = vld [vmem:[#allocation5 + $0x1e0] sm:$0xff]  ;;  %v345_v33 = vpack.c.bf16 %v103_v29, %v100_v28  ;;  %v104_v36 = vld [vmem:[#allocation5 + $0x208] sm:$0xff]  ;;  %v106_v37 = vld [vmem:[#allocation5 + $0x218] sm:$0xff] }
  0x3d   :  { %v109_v38 = vld [vmem:[#allocation5 + $0x230] sm:$0xff]  ;;  %v347_v39 = vpack.c.bf16 %v102_v34, %v99_v32  ;;  %v384_v40 = vpack.c.bf16 %v104_v36, %v101_v35  ;;  %v108_v43 = vld [vmem:[#allocation5 + $0x228] sm:$0xff]  ;;  %v107_v44 = vld [vmem:[#allocation5 + $0x220] sm:$0xff]  ;;  %v271_v51 = vunpack.c.0.s8 %v270_v49 }
  0x3e   :  { %328 = vmatpush1.bf16.msra.mxu0 %v327_v55  ;;  %v105_v41 = vld [vmem:[#allocation5 + $0x210] sm:$0xff]  ;;  %v349_v42 = vpack.c.bf16 %v109_v38, %v106_v37  ;;  %v110_v45 = vld [vmem:[#allocation5 + $0x238] sm:$0xff] }
  0x3f   :  { %370 = vmatpush1.bf16.msra.mxu1 %v369_v56  ;;  %330 = vmatprep.subr.bf16.mxu0 %v329_v58  ;;  %v351_v46 = vpack.c.bf16 %v108_v43, %v105_v41  ;;  %v387_v47 = vpack.c.bf16 %v110_v45, %v107_v44  ;;  %v274_v53 = vsub.s32 %v271_v51, %v273_v52 }
  0x40   :  { %371 = vmatprep.subr.bf16.mxu1 %v472_v0 }
  0x42   :  { %332 = vmatpush1.bf16.msra.mxu0 %v331_v2 }
  0x43   :  { %373 = vmatpush1.bf16.msra.mxu1 %v372_v3  ;;  %334 = vmatprep.subr.bf16.mxu0 %v333_v6 }
  0x44   :  { %374 = vmatprep.subr.bf16.mxu1 %v472_v0 }
  0x46   :  { %336 = vmatpush1.bf16.msra.mxu0 %v335_v12 }
  0x47   :  { %376 = vmatpush1.bf16.msra.mxu1 %v375_v13  ;;  %338 = vmatprep.subr.bf16.mxu0 %v337_v15 }
  0x48   :  { %377 = vmatprep.subr.bf16.mxu1 %v472_v0 }
  0x4a   :  { %340 = vmatpush1.bf16.msra.mxu0 %v339_v21 }
  0x4b   :  { %379 = vmatpush1.bf16.msra.mxu1 %v378_v22  ;;  %342 = vmatprep.subr.bf16.mxu0 %v341_v24 }
  0x4c   :  { %380 = vmatprep.subr.bf16.mxu1 %v472_v0 }
  0x4e   :  { %344 = vmatpush1.bf16.msra.mxu0 %v343_v30 }
  0x4f   :  { %382 = vmatpush1.bf16.msra.mxu1 %v381_v31  ;;  %346 = vmatprep.subr.bf16.mxu0 %v345_v33 }
  0x50   :  { %383 = vmatprep.subr.bf16.mxu1 %v472_v0 }
  0x52   :  { %348 = vmatpush1.bf16.msra.mxu0 %v347_v39 }
  0x53   :  { %385 = vmatpush1.bf16.msra.mxu1 %v384_v40  ;;  %350 = vmatprep.subr.bf16.mxu0 %v349_v42 }
  0x54   :  { %386 = vmatprep.subr.bf16.mxu1 %v472_v0 }
  0x56   :  { %352 = vmatpush1.bf16.msra.mxu0 %v351_v46 }
  0x57   :  { %388 = vmatpush1.bf16.msra.mxu1 %v387_v47 }
  0x59   :  { %189 = vmatmul.mubr.f32.vlgmr.msra.gmra.mrb[0].mxu0 %v527_v1 }
  0x5a   :  { %260 = vmatmul.mubr.f32.vlgmr.msra.gmra.mrb[0].mxu1 %v527_v1 }
 0x12c   :  { %v190_v54 = vpop.f32.mrb[0].mxu0 }
 0x12d   :  { %v261_v55 = vpop.f32.mrb[0].mxu1  ;;  %v192_v56 = vpop.f32.mrb[1].mxu0 }
 0x12e   :  { %v263_v57 = vpop.f32.mrb[1].mxu1  ;;  %v268_v58 = vcombine.low %v190_v54, %v192_v56  ;;  %v282_v59 = vrot.slane %v261_v55, %v274_v53 }
 0x130   :  { %v275_v0 = vrot.slane %v268_v58, %v274_v53 }
 0x132   :  { %v283_v60 = vcombine.low %v275_v0, %v282_v59 }
 0x134   :  { %285 = vst [vmem:[#allocation7] sm:$0x3f] %v283_v60 }
 0x135   :  { %451 = shalt.err (!%p448_p6)
}
 0x136   :  { %s452_s10 = scalar_lea.hbm %s555_s2, 96 }
 0x137   :  { %p453_p7 = scmp.ne.s32.totalorder %s555_s2, %s452_s10  ;;  %p456_p8 = scmp.lt.u32.totalorder %s452_s10, %s555_s2 }
 0x139   :  { %p458_p9 = pnand %p456_p8, %p453_p7 }
 0x13b   :  { %461 = shalt.err (!%p458_p9)
}
 0x13c   :  { %295 = dma.vmem_to_hbm [thread:$0]  %s293_s6, 96, %s555_s2, [#allocation4]  }
 0x13d   :  { %466 = dma.done.wait [#allocation4], 96  }
 0x13e   :  { %467 = vsyncadd [#allocation4], 4294967200 }
 0x13f   :  { %299 = vsyncpa [#allocation3], 1 }
 0x140   :  { %300 = vsyncpa [#allocation6], 1 }
 0x141   :  { %301 = vsyncpa [#allocation4], 1 }

</bundles_post_ra>
